<compile_context>
chip_gen: v7x
topology: tpu7x:2x2x1
jax: 0.10.0
libtpu: 0.0.40
codegen_flags: <defaults>
</compile_context>

<pallas_src>
import functools

import jax
import jax.numpy as jnp
from jax import lax
from jax.experimental import pallas as pl
from jax.experimental.pallas import tpu as pltpu


def _mha_kernel(q_ref, k_ref, v_ref, wq_ref, wk_ref, wv_ref, wp_ref,
                bp_ref, gamma_ref, beta_ref, out_ref, attn_ref=None, *, H, eps):
    B, TQ, D = q_ref.shape
    Lk = k_ref.shape[1]
    dk = wq_ref.shape[1] // H
    dv = wv_ref.shape[1] // H
    HB = H * B
    f32, bf16 = jnp.float32, jnp.bfloat16

    # Fold batch into rows; keep the f32 q for the residual path.
    q2 = q_ref[...].reshape(B * TQ, D)
    k2 = k_ref[...].reshape(B * Lk, D)
    v2 = v_ref[...].reshape(B * Lk, D)

    # ---- fused per-head projections: one lane-dense MXU matmul each ---------
    # (1/temper is folded into wq on the host; weights arrive as bf16.)
    qp = jnp.dot(q2.astype(bf16), wq_ref[...], preferred_element_type=f32)   # (B*TQ, H*dk)
    kp = jnp.dot(k2.astype(bf16), wk_ref[...], preferred_element_type=f32)   # (B*Lk, H*dk)
    vp = jnp.dot(v2.astype(bf16), wv_ref[...], preferred_element_type=f32)   # (B*Lk, H*dv)

    # ---- scaled dot-product scores, head-major (n = h*B + b) ----------------
    dims_qk = (((2,), (2,)), ((0,), (0,)))          # contract dk, batch over b
    score_parts = []
    for h in range(H):
        qh = qp[:, h * dk:(h + 1) * dk].reshape(B, TQ, dk).astype(bf16)
        kh = kp[:, h * dk:(h + 1) * dk].reshape(B, Lk, dk).astype(bf16)
        score_parts.append(
            lax.dot_general(qh, kh, dims_qk, preferred_element_type=f32))   # (B, TQ, Lk)
    scores = jnp.concatenate(score_parts, axis=0)                           # (H*B, TQ, Lk)

    # ---- softmax across the (head*batch) axis (legacy nn.Softmax() dim=0) ---
    m = scores[0]
    for n in range(1, HB):
        m = jnp.maximum(m, scores[n])
    e = jnp.exp(scores - m)                                                 # (H*B, TQ, Lk)
    den = e[0]
    for n in range(1, HB):
        den = den + e[n]
    attn = e * pl.reciprocal(den, approx=True)
    # TODO(synk): attention dropout is identity (eval-mode forward).
    if attn_ref is not None:
        attn_ref[...] = attn.astype(attn_ref.dtype)

    # ---- attn @ V (batched over batch), heads concatenated along lanes ------
    dims_av = (((2,), (1,)), ((0,), (0,)))          # contract Lk, batch over b
    ctx_parts = []
    for h in range(H):
        a_h = attn[h * B:(h + 1) * B].astype(bf16)                          # (B, TQ, Lk)
        v_h = vp[:, h * dv:(h + 1) * dv].reshape(B, Lk, dv).astype(bf16)    # (B, Lk, dv)
        ctx_parts.append(
            lax.dot_general(a_h, v_h, dims_av, preferred_element_type=f32)) # (B, TQ, dv)
    ctx = jnp.concatenate(ctx_parts, axis=-1).reshape(B * TQ, H * dv)

    # ---- fused output projection + residual + LayerNorm (row-batched) -------
    proj = jnp.dot(ctx.astype(bf16), wp_ref[...], preferred_element_type=f32) + bp_ref[...]
    # TODO(synk): output dropout is identity (eval-mode forward).
    x = proj + q2
    mean = jnp.mean(x, axis=-1, keepdims=True)
    var = jnp.mean((x - mean) ** 2, axis=-1, keepdims=True)
    y = (x - mean) * lax.rsqrt(var + eps)
    y = y * gamma_ref[...] + beta_ref[...]
    out_ref[...] = y.reshape(B, TQ, D).astype(out_ref.dtype)


def multi_head_attention(q, k, v, params, *, tq=None, return_attention=True):
    B, Lq, D = q.shape
    _, Lk, _ = k.shape
    H, _, dk = params["wq"].shape
    dv = params["wv"].shape[-1]

    if tq is None:
        tq = Lq if Lq <= 128 else 128
    assert Lq % tq == 0, "query tile size must divide the query length"

    temper = float(D) ** 0.5
    bf16 = jnp.bfloat16
    # Head-fused, pre-scaled, bf16 weights (lane axis = H*dk / H*dv, MXU-friendly).
    wq_f = (jnp.transpose(params["wq"], (1, 0, 2)) * (1.0 / temper)
            ).reshape(D, H * dk).astype(bf16)
    wk_f = jnp.transpose(params["wk"], (1, 0, 2)).reshape(D, H * dk).astype(bf16)
    wv_f = jnp.transpose(params["wv"], (1, 0, 2)).reshape(D, H * dv).astype(bf16)
    wp_t = jnp.transpose(params["wp"]).astype(bf16)          # (H*dv, D)
    bp = params["bp"].reshape(1, D).astype(jnp.float32)
    gamma = params["gamma"].reshape(1, D).astype(jnp.float32)
    beta = params["beta"].reshape(1, D).astype(jnp.float32)

    grid = (Lq // tq,)
    full2 = lambda i: (0, 0)
    full3 = lambda i: (0, 0, 0)
    qmap = lambda i: (0, i, 0)

    in_specs = [
        pl.BlockSpec((B, tq, D), qmap),          # q (tiled over query blocks)
        pl.BlockSpec((B, Lk, D), full3),         # k (whole, resident)
        pl.BlockSpec((B, Lk, D), full3),         # v (whole, resident)
        pl.BlockSpec((D, H * dk), full2),        # wq (pre-scaled, bf16)
        pl.BlockSpec((D, H * dk), full2),        # wk
        pl.BlockSpec((D, H * dv), full2),        # wv
        pl.BlockSpec((H * dv, D), full2),        # projection weight^T
        pl.BlockSpec((1, D), full2),             # projection bias
        pl.BlockSpec((1, D), full2),             # LayerNorm gamma
        pl.BlockSpec((1, D), full2),             # LayerNorm beta
    ]
    out_spec = pl.BlockSpec((B, tq, D), qmap)
    out_sds = jax.ShapeDtypeStruct((B, Lq, D), jnp.float32)
    if return_attention:
        out_shape = (out_sds, jax.ShapeDtypeStruct((H * B, Lq, Lk), jnp.float32))
        out_specs = (out_spec, pl.BlockSpec((H * B, tq, Lk), qmap))
    else:
        out_shape = (out_sds,)
        out_specs = (out_spec,)

    kernel = functools.partial(_mha_kernel, H=H, eps=1e-5)
    results = pl.pallas_call(
        kernel,
        out_shape=out_shape,
        grid=grid,
        in_specs=in_specs,
        out_specs=out_specs,
        compiler_params=pltpu.CompilerParams(
            # Independent query tiles -> megacore-shard the grid on v7x.
            dimension_semantics=("parallel",),
            # Safe on v5e/v6e/v7x; raise for larger shapes if needed.
            vmem_limit_bytes=32 * 1024 * 1024,
        ),
    )(q, k, v, wq_f, wk_f, wv_f, wp_t, bp, gamma, beta)

    if return_attention:
        return results[0], results[1]
    return results[0]


def reference(q, k, v, params):
    """Pure-JAX transcription of the PyTorch forward (for verification)."""
    B, Lq, D = q.shape
    H, _, dk = params["wq"].shape
    dv = params["wv"].shape[-1]
    hp = jax.lax.Precision.HIGHEST
    qv = jnp.einsum("bld,hdk->hblk", q, params["wq"], precision=hp).reshape(H * B, Lq, dk)
    kv = jnp.einsum("bld,hdk->hblk", k, params["wk"], precision=hp).reshape(H * B, -1, dk)
    vv = jnp.einsum("bld,hdk->hblk", v, params["wv"], precision=hp).reshape(H * B, -1, dv)
    scores = jnp.einsum("nqd,nkd->nqk", qv, kv, precision=hp) / jnp.sqrt(jnp.float32(D))
    attn = jax.nn.softmax(scores, axis=0)                 # legacy nn.Softmax() dim for 3D
    out = jnp.einsum("nqk,nkv->nqv", attn, vv, precision=hp)
    out = out.reshape(H, B, Lq, dv).transpose(1, 2, 0, 3).reshape(B, Lq, H * dv)
    out = jnp.einsum("blf,df->bld", out, params["wp"], precision=hp) + params["bp"]
    x = out + q
    mean = x.mean(-1, keepdims=True)
    var = ((x - mean) ** 2).mean(-1, keepdims=True)
    y = (x - mean) / jnp.sqrt(var + 1e-5) * params["gamma"] + params["beta"]
    return y, attn


if __name__ == "__main__":
    B, L, D = 2, 16, 32
    H, dk, dv = 2, 16, 16

    key = jax.random.PRNGKey(0)
    ks = jax.random.split(key, 8)
    q = jax.random.normal(ks[0], (B, L, D), jnp.float32)
    k = jax.random.normal(ks[1], (B, L, D), jnp.float32)
    v = jax.random.normal(ks[2], (B, L, D), jnp.float32)

    # deterministic synthetic parameters (shapes match the nn.Module __init__)
    std_qk = (2.0 / (D * dk + H * dk)) ** 0.5        # xavier_normal for (H, D, dk)
    std_v = (2.0 / (D * dv + H * dv)) ** 0.5
    lim = 1.0 / (H * dv) ** 0.5                      # nn.Linear default bound
    params = dict(
        wq=std_qk * jax.random.normal(ks[3], (H, D, dk), jnp.float32),
        wk=std_qk * jax.random.normal(ks[4], (H, D, dk), jnp.float32),
        wv=std_v * jax.random.normal(ks[5], (H, D, dv), jnp.float32),
        wp=jax.random.uniform(ks[6], (D, H * dv), jnp.float32, -lim, lim),
        bp=jax.random.uniform(ks[7], (D,), jnp.float32, -lim, lim),
        gamma=jnp.ones((D,), jnp.float32),
        beta=jnp.zeros((D,), jnp.float32),
    )

    # full path (out + attention), tq=8 -> 2 grid steps over the query axis
    out, attn = multi_head_attention(q, k, v, params, tq=8)
    jax.block_until_ready((out, attn))

    ref_out, ref_attn = reference(q, k, v, params)
    assert out.shape == (B, L, D) and attn.shape == (H * B, L, L)
    assert bool(jnp.all(jnp.isfinite(out))) and bool(jnp.all(jnp.isfinite(attn)))
    assert jnp.allclose(attn, ref_attn, atol=2e-2, rtol=2e-2)
    assert jnp.allclose(out, ref_out, atol=2e-2, rtol=2e-2)

    # output-only path (skips the (H*B, Lq, Lk) attention writeback)
    out_only = multi_head_attention(q, k, v, params, tq=8, return_attention=False)
    jax.block_until_ready(out_only)
    assert jnp.allclose(out_only, ref_out, atol=2e-2, rtol=2e-2)

    print("KERNEL_OK")
</pallas_src>

<mosaic_0001>
module attributes {stable_mosaic.version = 11 : i64} {
  func.func @_mha_kernel(%arg0: i32, %arg1: memref<2x8x32xf32, #tpu.memory_space<vmem>>, %arg2: memref<2x16x32xf32, #tpu.memory_space<vmem>>, %arg3: memref<2x16x32xf32, #tpu.memory_space<vmem>>, %arg4: memref<32x32xbf16, #tpu.memory_space<vmem>>, %arg5: memref<32x32xbf16, #tpu.memory_space<vmem>>, %arg6: memref<32x32xbf16, #tpu.memory_space<vmem>>, %arg7: memref<32x32xbf16, #tpu.memory_space<vmem>>, %arg8: memref<1x32xf32, #tpu.memory_space<vmem>>, %arg9: memref<1x32xf32, #tpu.memory_space<vmem>>, %arg10: memref<1x32xf32, #tpu.memory_space<vmem>>, %arg11: memref<2x8x32xf32, #tpu.memory_space<vmem>>, %arg12: memref<4x8x16xf32, #tpu.memory_space<vmem>>) attributes {dimension_semantics = [#tpu.dimension_semantics<parallel>], iteration_bounds = array<i64: 2>, scalar_prefetch = 0 : i64, scratch_operands = 0 : i64, tpu.core_type = #tpu.core_type<tc>, window_params = [{transform_indices = @transform_0, window_bounds = array<i64: 2, 8, 32>}, {pipeline_mode = #tpu.pipeline_mode<synchronous>, transform_indices = @transform_1, window_bounds = array<i64: 2, 16, 32>}, {pipeline_mode = #tpu.pipeline_mode<synchronous>, transform_indices = @transform_2, window_bounds = array<i64: 2, 16, 32>}, {pipeline_mode = #tpu.pipeline_mode<synchronous>, transform_indices = @transform_3, window_bounds = array<i64: 32, 32>}, {pipeline_mode = #tpu.pipeline_mode<synchronous>, transform_indices = @transform_4, window_bounds = array<i64: 32, 32>}, {pipeline_mode = #tpu.pipeline_mode<synchronous>, transform_indices = @transform_5, window_bounds = array<i64: 32, 32>}, {pipeline_mode = #tpu.pipeline_mode<synchronous>, transform_indices = @transform_6, window_bounds = array<i64: 32, 32>}, {pipeline_mode = #tpu.pipeline_mode<synchronous>, transform_indices = @transform_7, window_bounds = array<i64: 1, 32>}, {pipeline_mode = #tpu.pipeline_mode<synchronous>, transform_indices = @transform_8, window_bounds = array<i64: 1, 32>}, {pipeline_mode = #tpu.pipeline_mode<synchronous>, transform_indices = @transform_9, window_bounds = array<i64: 1, 32>}, {transform_indices = @transform_10, window_bounds = array<i64: 2, 8, 32>}, {transform_indices = @transform_11, window_bounds = array<i64: 4, 8, 16>}]} {
    %c0 = arith.constant 0 : index
    %c0_0 = arith.constant 0 : index
    %c0_1 = arith.constant 0 : index
    %0 = vector.load %arg1[%c0, %c0_0, %c0_1] : memref<2x8x32xf32, #tpu.memory_space<vmem>>, vector<2x8x32xf32>
    %1 = vector.shape_cast %0 : vector<2x8x32xf32> to vector<16x32xf32>
    %c0_2 = arith.constant 0 : index
    %c0_3 = arith.constant 0 : index
    %c0_4 = arith.constant 0 : index
    %2 = vector.load %arg2[%c0_2, %c0_3, %c0_4] : memref<2x16x32xf32, #tpu.memory_space<vmem>>, vector<2x16x32xf32>
    %3 = vector.shape_cast %2 : vector<2x16x32xf32> to vector<32x32xf32>
    %c0_5 = arith.constant 0 : index
    %c0_6 = arith.constant 0 : index
    %c0_7 = arith.constant 0 : index
    %4 = vector.load %arg3[%c0_5, %c0_6, %c0_7] : memref<2x16x32xf32, #tpu.memory_space<vmem>>, vector<2x16x32xf32>
    %5 = vector.shape_cast %4 : vector<2x16x32xf32> to vector<32x32xf32>
    %6 = arith.truncf %1 : vector<16x32xf32> to vector<16x32xbf16>
    %c0_8 = arith.constant 0 : index
    %c0_9 = arith.constant 0 : index
    %7 = vector.load %arg4[%c0_8, %c0_9] : memref<32x32xbf16, #tpu.memory_space<vmem>>, vector<32x32xbf16>
    %cst = arith.constant dense<0.000000e+00> : vector<16x32xf32>
    %8 = tpu.matmul %6, %7, %cst {dimension_numbers = #tpu.dot_dimension_numbers<[1], [0], [0], [1], [0, 0, 1, 1], [], []>} : vector<16x32xbf16>, vector<32x32xbf16>, vector<16x32xf32> -> vector<16x32xf32>
    %9 = arith.truncf %3 : vector<32x32xf32> to vector<32x32xbf16>
    %c0_10 = arith.constant 0 : index
    %c0_11 = arith.constant 0 : index
    %10 = vector.load %arg5[%c0_10, %c0_11] : memref<32x32xbf16, #tpu.memory_space<vmem>>, vector<32x32xbf16>
    %cst_12 = arith.constant dense<0.000000e+00> : vector<32x32xf32>
    %11 = tpu.matmul %9, %10, %cst_12 {dimension_numbers = #tpu.dot_dimension_numbers<[1], [0], [0], [1], [0, 0, 1, 1], [], []>} : vector<32x32xbf16>, vector<32x32xbf16>, vector<32x32xf32> -> vector<32x32xf32>
    %12 = arith.truncf %5 : vector<32x32xf32> to vector<32x32xbf16>
    %c0_13 = arith.constant 0 : index
    %c0_14 = arith.constant 0 : index
    %13 = vector.load %arg6[%c0_13, %c0_14] : memref<32x32xbf16, #tpu.memory_space<vmem>>, vector<32x32xbf16>
    %cst_15 = arith.constant dense<0.000000e+00> : vector<32x32xf32>
    %14 = tpu.matmul %12, %13, %cst_15 {dimension_numbers = #tpu.dot_dimension_numbers<[1], [0], [0], [1], [0, 0, 1, 1], [], []>} : vector<32x32xbf16>, vector<32x32xbf16>, vector<32x32xf32> -> vector<32x32xf32>
    %15 = vector.extract_strided_slice %8 {offsets = [0, 0], sizes = [16, 16], strides = [1, 1]} : vector<16x32xf32> to vector<16x16xf32>
    %16 = vector.shape_cast %15 : vector<16x16xf32> to vector<2x8x16xf32>
    %17 = arith.truncf %16 : vector<2x8x16xf32> to vector<2x8x16xbf16>
    %18 = vector.extract_strided_slice %11 {offsets = [0, 0], sizes = [32, 16], strides = [1, 1]} : vector<32x32xf32> to vector<32x16xf32>
    %19 = vector.shape_cast %18 : vector<32x16xf32> to vector<2x16x16xf32>
    %20 = arith.truncf %19 : vector<2x16x16xf32> to vector<2x16x16xbf16>
    %cst_16 = arith.constant dense<0.000000e+00> : vector<2x8x16xf32>
    %21 = tpu.matmul %17, %20, %cst_16 {dimension_numbers = #tpu.dot_dimension_numbers<[2], [2], [1], [1], [0, 0, 0, 1, 1, 1], [0], [0]>} : vector<2x8x16xbf16>, vector<2x16x16xbf16>, vector<2x8x16xf32> -> vector<2x8x16xf32>
    %22 = vector.extract_strided_slice %8 {offsets = [0, 16], sizes = [16, 16], strides = [1, 1]} : vector<16x32xf32> to vector<16x16xf32>
    %23 = vector.shape_cast %22 : vector<16x16xf32> to vector<2x8x16xf32>
    %24 = arith.truncf %23 : vector<2x8x16xf32> to vector<2x8x16xbf16>
    %25 = vector.extract_strided_slice %11 {offsets = [0, 16], sizes = [32, 16], strides = [1, 1]} : vector<32x32xf32> to vector<32x16xf32>
    %26 = vector.shape_cast %25 : vector<32x16xf32> to vector<2x16x16xf32>
    %27 = arith.truncf %26 : vector<2x16x16xf32> to vector<2x16x16xbf16>
    %cst_17 = arith.constant dense<0.000000e+00> : vector<2x8x16xf32>
    %28 = tpu.matmul %24, %27, %cst_17 {dimension_numbers = #tpu.dot_dimension_numbers<[2], [2], [1], [1], [0, 0, 0, 1, 1, 1], [0], [0]>} : vector<2x8x16xbf16>, vector<2x16x16xbf16>, vector<2x8x16xf32> -> vector<2x8x16xf32>
    %29 = tpu.concatenate %21, %28 in 0 : vector<2x8x16xf32>, vector<2x8x16xf32> -> vector<4x8x16xf32>
    %30 = vector.extract_strided_slice %29 {offsets = [0, 0, 0], sizes = [1, 8, 16], strides = [1, 1, 1]} : vector<4x8x16xf32> to vector<1x8x16xf32>
    %31 = vector.shape_cast %30 : vector<1x8x16xf32> to vector<8x16xf32>
    %32 = vector.extract_strided_slice %29 {offsets = [1, 0, 0], sizes = [1, 8, 16], strides = [1, 1, 1]} : vector<4x8x16xf32> to vector<1x8x16xf32>
    %33 = vector.shape_cast %32 : vector<1x8x16xf32> to vector<8x16xf32>
    %34 = arith.maximumf %31, %33 : vector<8x16xf32>
    %35 = vector.extract_strided_slice %29 {offsets = [2, 0, 0], sizes = [1, 8, 16], strides = [1, 1, 1]} : vector<4x8x16xf32> to vector<1x8x16xf32>
    %36 = vector.shape_cast %35 : vector<1x8x16xf32> to vector<8x16xf32>
    %37 = arith.maximumf %34, %36 : vector<8x16xf32>
    %38 = vector.extract_strided_slice %29 {offsets = [3, 0, 0], sizes = [1, 8, 16], strides = [1, 1, 1]} : vector<4x8x16xf32> to vector<1x8x16xf32>
    %39 = vector.shape_cast %38 : vector<1x8x16xf32> to vector<8x16xf32>
    %40 = arith.maximumf %37, %39 : vector<8x16xf32>
    %41 = vector.shape_cast %40 : vector<8x16xf32> to vector<1x8x16xf32>
    %42 = vector.broadcast %41 : vector<1x8x16xf32> to vector<4x8x16xf32>
    %43 = arith.subf %29, %42 : vector<4x8x16xf32>
    %44 = math.exp %43 : vector<4x8x16xf32>
    %45 = vector.extract_strided_slice %44 {offsets = [0, 0, 0], sizes = [1, 8, 16], strides = [1, 1, 1]} : vector<4x8x16xf32> to vector<1x8x16xf32>
    %46 = vector.shape_cast %45 : vector<1x8x16xf32> to vector<8x16xf32>
    %47 = vector.extract_strided_slice %44 {offsets = [1, 0, 0], sizes = [1, 8, 16], strides = [1, 1, 1]} : vector<4x8x16xf32> to vector<1x8x16xf32>
    %48 = vector.shape_cast %47 : vector<1x8x16xf32> to vector<8x16xf32>
    %49 = arith.addf %46, %48 : vector<8x16xf32>
    %50 = vector.extract_strided_slice %44 {offsets = [2, 0, 0], sizes = [1, 8, 16], strides = [1, 1, 1]} : vector<4x8x16xf32> to vector<1x8x16xf32>
    %51 = vector.shape_cast %50 : vector<1x8x16xf32> to vector<8x16xf32>
    %52 = arith.addf %49, %51 : vector<8x16xf32>
    %53 = vector.extract_strided_slice %44 {offsets = [3, 0, 0], sizes = [1, 8, 16], strides = [1, 1, 1]} : vector<4x8x16xf32> to vector<1x8x16xf32>
    %54 = vector.shape_cast %53 : vector<1x8x16xf32> to vector<8x16xf32>
    %55 = arith.addf %52, %54 : vector<8x16xf32>
    %56 = tpu.reciprocal %55 {approx = true} : vector<8x16xf32> -> vector<8x16xf32>
    %57 = vector.shape_cast %56 : vector<8x16xf32> to vector<1x8x16xf32>
    %58 = vector.broadcast %57 : vector<1x8x16xf32> to vector<4x8x16xf32>
    %59 = arith.mulf %44, %58 : vector<4x8x16xf32>
    %c0_18 = arith.constant 0 : index
    %c0_19 = arith.constant 0 : index
    %c0_20 = arith.constant 0 : index
    %60 = vector.load %arg12[%c0_18, %c0_19, %c0_20] : memref<4x8x16xf32, #tpu.memory_space<vmem>>, vector<4x8x16xf32>
    tpu.vector_store %arg12[%c0_18, %c0_19, %c0_20], %59 {strides = array<i32>} : memref<4x8x16xf32, #tpu.memory_space<vmem>>, vector<4x8x16xf32>,
    %61 = vector.extract_strided_slice %59 {offsets = [0, 0, 0], sizes = [2, 8, 16], strides = [1, 1, 1]} : vector<4x8x16xf32> to vector<2x8x16xf32>
    %62 = arith.truncf %61 : vector<2x8x16xf32> to vector<2x8x16xbf16>
    %63 = vector.extract_strided_slice %14 {offsets = [0, 0], sizes = [32, 16], strides = [1, 1]} : vector<32x32xf32> to vector<32x16xf32>
    %64 = vector.shape_cast %63 : vector<32x16xf32> to vector<2x16x16xf32>
    %65 = arith.truncf %64 : vector<2x16x16xf32> to vector<2x16x16xbf16>
    %cst_21 = arith.constant dense<0.000000e+00> : vector<2x8x16xf32>
    %66 = tpu.matmul %62, %65, %cst_21 {dimension_numbers = #tpu.dot_dimension_numbers<[2], [1], [1], [2], [0, 0, 0, 1, 1, 2], [0], [0]>} : vector<2x8x16xbf16>, vector<2x16x16xbf16>, vector<2x8x16xf32> -> vector<2x8x16xf32>
    %67 = vector.extract_strided_slice %59 {offsets = [2, 0, 0], sizes = [2, 8, 16], strides = [1, 1, 1]} : vector<4x8x16xf32> to vector<2x8x16xf32>
    %68 = arith.truncf %67 : vector<2x8x16xf32> to vector<2x8x16xbf16>
    %69 = vector.extract_strided_slice %14 {offsets = [0, 16], sizes = [32, 16], strides = [1, 1]} : vector<32x32xf32> to vector<32x16xf32>
    %70 = vector.shape_cast %69 : vector<32x16xf32> to vector<2x16x16xf32>
    %71 = arith.truncf %70 : vector<2x16x16xf32> to vector<2x16x16xbf16>
    %cst_22 = arith.constant dense<0.000000e+00> : vector<2x8x16xf32>
    %72 = tpu.matmul %68, %71, %cst_22 {dimension_numbers = #tpu.dot_dimension_numbers<[2], [1], [1], [2], [0, 0, 0, 1, 1, 2], [0], [0]>} : vector<2x8x16xbf16>, vector<2x16x16xbf16>, vector<2x8x16xf32> -> vector<2x8x16xf32>
    %73 = tpu.concatenate %66, %72 in 2 : vector<2x8x16xf32>, vector<2x8x16xf32> -> vector<2x8x32xf32>
    %74 = vector.shape_cast %73 : vector<2x8x32xf32> to vector<16x32xf32>
    %75 = arith.truncf %74 : vector<16x32xf32> to vector<16x32xbf16>
    %c0_23 = arith.constant 0 : index
    %c0_24 = arith.constant 0 : index
    %76 = vector.load %arg7[%c0_23, %c0_24] : memref<32x32xbf16, #tpu.memory_space<vmem>>, vector<32x32xbf16>
    %cst_25 = arith.constant dense<0.000000e+00> : vector<16x32xf32>
    %77 = tpu.matmul %75, %76, %cst_25 {dimension_numbers = #tpu.dot_dimension_numbers<[1], [0], [0], [1], [0, 0, 1, 1], [], []>} : vector<16x32xbf16>, vector<32x32xbf16>, vector<16x32xf32> -> vector<16x32xf32>
    %c0_26 = arith.constant 0 : index
    %c0_27 = arith.constant 0 : index
    %78 = vector.load %arg8[%c0_26, %c0_27] : memref<1x32xf32, #tpu.memory_space<vmem>>, vector<1x32xf32>
    %79 = vector.broadcast %78 : vector<1x32xf32> to vector<16x32xf32>
    %80 = arith.addf %77, %79 : vector<16x32xf32>
    %81 = arith.addf %80, %1 : vector<16x32xf32>
    %cst_28 = arith.constant dense<0.000000e+00> : vector<16xf32>
    %82 = vector.multi_reduction <add>, %81, %cst_28 [1] : vector<16x32xf32> to vector<16xf32>
    %83 = vector.shape_cast %82 : vector<16xf32> to vector<16x1xf32>
    %cst_29 = arith.constant 3.200000e+01 : f32
    %84 = vector.broadcast %cst_29 : f32 to vector<16x1xf32>
    %85 = arith.divf %83, %84 : vector<16x1xf32>
    %86 = vector.broadcast %85 : vector<16x1xf32> to vector<16x32xf32>
    %87 = arith.subf %81, %86 : vector<16x32xf32>
    %88 = arith.mulf %87, %87 : vector<16x32xf32>
    %cst_30 = arith.constant dense<0.000000e+00> : vector<16xf32>
    %89 = vector.multi_reduction <add>, %88, %cst_30 [1] : vector<16x32xf32> to vector<16xf32>
    %90 = vector.shape_cast %89 : vector<16xf32> to vector<16x1xf32>
    %cst_31 = arith.constant 3.200000e+01 : f32
    %91 = vector.broadcast %cst_31 : f32 to vector<16x1xf32>
    %92 = arith.divf %90, %91 : vector<16x1xf32>
    %93 = vector.broadcast %85 : vector<16x1xf32> to vector<16x32xf32>
    %94 = arith.subf %81, %93 : vector<16x32xf32>
    %cst_32 = arith.constant 9.99999974E-6 : f32
    %95 = vector.broadcast %cst_32 : f32 to vector<16x1xf32>
    %96 = arith.addf %92, %95 : vector<16x1xf32>
    %97 = math.rsqrt %96 : vector<16x1xf32>
    %98 = vector.broadcast %97 : vector<16x1xf32> to vector<16x32xf32>
    %99 = arith.mulf %94, %98 : vector<16x32xf32>
    %c0_33 = arith.constant 0 : index
    %c0_34 = arith.constant 0 : index
    %100 = vector.load %arg9[%c0_33, %c0_34] : memref<1x32xf32, #tpu.memory_space<vmem>>, vector<1x32xf32>
    %101 = vector.broadcast %100 : vector<1x32xf32> to vector<16x32xf32>
    %102 = arith.mulf %99, %101 : vector<16x32xf32>
    %c0_35 = arith.constant 0 : index
    %c0_36 = arith.constant 0 : index
    %103 = vector.load %arg10[%c0_35, %c0_36] : memref<1x32xf32, #tpu.memory_space<vmem>>, vector<1x32xf32>
    %104 = vector.broadcast %103 : vector<1x32xf32> to vector<16x32xf32>
    %105 = arith.addf %102, %104 : vector<16x32xf32>
    %106 = vector.shape_cast %105 : vector<16x32xf32> to vector<2x8x32xf32>
    %c0_37 = arith.constant 0 : index
    %c0_38 = arith.constant 0 : index
    %c0_39 = arith.constant 0 : index
    %107 = vector.load %arg11[%c0_37, %c0_38, %c0_39] : memref<2x8x32xf32, #tpu.memory_space<vmem>>, vector<2x8x32xf32>
    tpu.vector_store %arg11[%c0_37, %c0_38, %c0_39], %106 {strides = array<i32>} : memref<2x8x32xf32, #tpu.memory_space<vmem>>, vector<2x8x32xf32>,
    return
  }
  func.func @transform_0(%arg0: i32) -> (i32, i32, i32) {
    %c0_i32 = arith.constant 0 : i32
    %c0_i32_0 = arith.constant 0 : i32
    %c0_i32_1 = arith.constant 0 : i32
    return %c0_i32, %arg0, %c0_i32_0 : i32, i32, i32
  }
  func.func @transform_1(%arg0: i32) -> (i32, i32, i32) {
    %c0_i32 = arith.constant 0 : i32
    %c0_i32_0 = arith.constant 0 : i32
    %c0_i32_1 = arith.constant 0 : i32
    %c0_i32_2 = arith.constant 0 : i32
    return %c0_i32, %c0_i32_0, %c0_i32_1 : i32, i32, i32
  }
  func.func @transform_2(%arg0: i32) -> (i32, i32, i32) {
    %c0_i32 = arith.constant 0 : i32
    %c0_i32_0 = arith.constant 0 : i32
    %c0_i32_1 = arith.constant 0 : i32
    %c0_i32_2 = arith.constant 0 : i32
    return %c0_i32, %c0_i32_0, %c0_i32_1 : i32, i32, i32
  }
  func.func @transform_3(%arg0: i32) -> (i32, i32) {
    %c0_i32 = arith.constant 0 : i32
    %c0_i32_0 = arith.constant 0 : i32
    %c0_i32_1 = arith.constant 0 : i32
    return %c0_i32, %c0_i32_0 : i32, i32
  }
  func.func @transform_4(%arg0: i32) -> (i32, i32) {
    %c0_i32 = arith.constant 0 : i32
    %c0_i32_0 = arith.constant 0 : i32
    %c0_i32_1 = arith.constant 0 : i32
    return %c0_i32, %c0_i32_0 : i32, i32
  }
  func.func @transform_5(%arg0: i32) -> (i32, i32) {
    %c0_i32 = arith.constant 0 : i32
    %c0_i32_0 = arith.constant 0 : i32
    %c0_i32_1 = arith.constant 0 : i32
    return %c0_i32, %c0_i32_0 : i32, i32
  }
  func.func @transform_6(%arg0: i32) -> (i32, i32) {
    %c0_i32 = arith.constant 0 : i32
    %c0_i32_0 = arith.constant 0 : i32
    %c0_i32_1 = arith.constant 0 : i32
    return %c0_i32, %c0_i32_0 : i32, i32
  }
  func.func @transform_7(%arg0: i32) -> (i32, i32) {
    %c0_i32 = arith.constant 0 : i32
    %c0_i32_0 = arith.constant 0 : i32
    %c0_i32_1 = arith.constant 0 : i32
    return %c0_i32, %c0_i32_0 : i32, i32
  }
  func.func @transform_8(%arg0: i32) -> (i32, i32) {
    %c0_i32 = arith.constant 0 : i32
    %c0_i32_0 = arith.constant 0 : i32
    %c0_i32_1 = arith.constant 0 : i32
    return %c0_i32, %c0_i32_0 : i32, i32
  }
  func.func @transform_9(%arg0: i32) -> (i32, i32) {
    %c0_i32 = arith.constant 0 : i32
    %c0_i32_0 = arith.constant 0 : i32
    %c0_i32_1 = arith.constant 0 : i32
    return %c0_i32, %c0_i32_0 : i32, i32
  }
  func.func @transform_10(%arg0: i32) -> (i32, i32, i32) {
    %c0_i32 = arith.constant 0 : i32
    %c0_i32_0 = arith.constant 0 : i32
    %c0_i32_1 = arith.constant 0 : i32
    return %c0_i32, %arg0, %c0_i32_0 : i32, i32, i32
  }
  func.func @transform_11(%arg0: i32) -> (i32, i32, i32) {
    %c0_i32 = arith.constant 0 : i32
    %c0_i32_0 = arith.constant 0 : i32
    %c0_i32_1 = arith.constant 0 : i32
    return %c0_i32, %arg0, %c0_i32_0 : i32, i32, i32
  }
}

</mosaic_0001>

<bundles_post_ra>
// kernel: tpu_custom_call.1
= control target key start
LH: loop header
LB: loop body
LE: loop exit
PB: predicated region body
PF: predicated region fallthrough
CT: control target
= control target key end

     0   :  { %s2555_s0 = inlined_call_operand.hbm [shape: f32[2,16,32], index: 0, kind: input, shape index: {}]   ;;  %s2556_s1 = inlined_call_operand.hbm [shape: f32[2,16,32], index: 1, kind: input, shape index: {}]   ;;  %s2557_s2 = inlined_call_operand.hbm [shape: f32[2,16,32], index: 2, kind: input, shape index: {}]   ;;  %s2558_s3 = inlined_call_operand.hbm [shape: bf16[32,32], index: 3, kind: input, shape index: {}]   ;;  %s2559_s4 = inlined_call_operand.hbm [shape: bf16[32,32], index: 4, kind: input, shape index: {}]   ;;  %s2560_s5 = inlined_call_operand.vmem [shape: bf16[32,32], index: 5, kind: input, shape index: {}]   ;;  %s2561_s6 = inlined_call_operand.hbm [shape: bf16[32,32], index: 6, kind: input, shape index: {}]   ;;  %s2562_s7 = inlined_call_operand.vmem [shape: f32[1,32], index: 7, kind: input, shape index: {}]   ;;  %s2563_s8 = inlined_call_operand.vmem [shape: f32[1,32], index: 8, kind: input, shape index: {}]   ;;  %s2564_s9 = inlined_call_operand.vmem [shape: f32[1,32], index: 9, kind: input, shape index: {}]   ;;  %s2565_s10 = inlined_call_operand.hbm [shape: f32[2,16,32], index: 10, kind: output, shape index: {0}]   ;;  %s2566_s11 = inlined_call_operand.hbm [shape: f32[4,16,16], index: 11, kind: output, shape index: {1}]  }
   0x1   :  { %2579 = sst [smem:[#allocation24_spill]] %s2556_s1 }
   0x2   :  { %2580 = sst [smem:[#allocation25_spill]] %s2557_s2 }
   0x3   :  { %2581 = sst [smem:[#allocation26_spill]] %s2564_s9 }
   0x4   :  { %2582 = sst [smem:[#allocation27_spill]] %s2565_s10 }
   0x5   :  { %17 = vsyncpa [#allocation3], 0 }
   0x6   :  { %19 = vsyncpa [#allocation3 + $0x1], 0 }
   0x7   :  { %20 = vsyncpa [#allocation6], 0 }
   0x8   :  { %21 = vsyncpa [#allocation9], 0 }
   0x9   :  { %22 = vsyncpa [#allocation12], 0 }
   0xa   :  { %23 = vsyncpa [#allocation4], 0 }
   0xb   :  { %25 = vsyncpa [#allocation4 + $0x1], 0 }
   0xc   :  { %26 = vsyncpa [#allocation15], 0 }
   0xd   :  { %28 = vsyncpa [#allocation15 + $0x1], 0  ;;  %s2097_s17 = smov 0   ;;  %s2099_s18 = smov 0  }
   0xe   :  { %s2101_s19 = smov 0   ;;  %s2103_s20 = smov 0  }
   0xf LB: > { %2583 = sst [smem:[#allocation22_spill]] %s2003_s17  ;;  %s2118_s21 = sadd.s32 4294967295, %s2015_s20   ;;  %s2015_s20 = sphi %s2103_s20, %s2615_s20   ;;  %s2011_s19 = sphi %s2101_s19, %s2614_s19   ;;  %s2007_s18 = sphi %s2099_s18, %s2613_s18   ;;  %s2003_s17 = sphi %s2097_s17, %s2612_s17  }
  0x10   : > { %s1434_s22 = sadd.s32 4294967294, %s2015_s20   ;;  %p54_p0 = scmp.ne.s32.totalorder %s2007_s18, %s2003_s17 }
  0x11   : > { %p2567_p1 = scmp.eq.s32.totalorder %s2118_s21, 0  ;;  %p273_p3 = scmp.eq.s32.totalorder %s1434_s22, 1 }
  0x12   : > { %p1435_p5 = scmp.ge.s32.totalorder %s2015_s20, 1  ;;  %p306_p7 = scmp.lt.s32.totalorder %s2015_s20, 3 }
  0x13   : > { %p2127_p4 = por %p2567_p1, %p54_p0  ;;  %p2132_p6 = por %p273_p3, %p54_p0 }
  0x14   : > { %p2137_p8 = pnand %p1435_p5, %p306_p7  ;;  %s2017_s26 = smov [#allocation5]  }
  0x15   : > { %s2584_s23 = scalar_select %p2127_p4, 1, 0 }
  0x16   : > { %s2585_s24 = scalar_select %p2132_p6, 1, 0 }
  0x17   : > { %s2587_s25 = scalar_select %p2137_p8, 1, 0 }
  0x18   : > { %2586 = sst [smem:[#allocation23_spill]] %s2585_s24  ;;  %s318_s27 = sshll.u32 %s2017_s26, 4  ;;  %s2141_s27 = int_to_ptr.vmem [resolvable:$true] %s318_s27 }
  0x19   : > { %p1620_p9 = pneg %p2137_p8  ;;  %s2018_s29 = smov [#allocation8]  }
  0x1a   : > { %s344_s30 = sshll.u32 %s2018_s29, 4  ;;  %s2589_s1 = sld [smem:[#allocation24_spill]]  ;;  %s2152_s30 = int_to_ptr.vmem [resolvable:$true] %s344_s30 }
  0x1b   : > { %p2148_p11 = pnand %p1620_p9, %p2567_p1 }
  0x1d   : > { %p2162_p13 = pneg %p2148_p11 }
  0x20   : > { %s1735_s14 = scalar_lea.hbm %s2589_s1, 512 }
  0x21   : > { %p1736_p12 = scmp.ne.s32.totalorder %s2589_s1, %s1735_s14  ;;  %p1742_p5 = scmp.lt.u32.totalorder %s1735_s14, %s2589_s1 }
  0x23   : > { %p1738_p0 = pnand %p2162_p13, %p1736_p12 }
  0x25   : > { %p1739_p3 = pneg %p1738_p0 }
  0x27   : > { %p1744_p7 = pnand %p1742_p5, %p1739_p3 }
  0x29   : > { %1747 = shalt.err (!%p1744_p7)
}
  0x2a   : > { %s1748_s12 = scalar_lea.vmem %s2141_s27, 512  ;;  %p1756_p2 = scmp.lt.s32.totalorder %s2141_s27, %s2141_s27 }
  0x2b   : > { %p1749_p9 = scmp.ne.s32.totalorder %s2141_s27, %s1748_s12  ;;  %p1757_p6 = scmp.lt.s32.totalorder %s1748_s12, %s1748_s12 }
  0x2d   : > { %p1751_p10 = pnand %p1749_p9, %p2162_p13  ;;  %p1758_p12 = por %p1757_p6, %p1756_p2 }
  0x2f   : > { %p1752_p1 = pneg %p1751_p10 }
  0x31   : > { %p1759_p0 = pnand %p1758_p12, %p1752_p1 }
  0x33   : > { %1762 = shalt.err (!%p1759_p0)
}
  0x34   : > { %s2571_s13 = smov 128   ;;  %s2573_s14 = smov 8  }
  0x35   : > { %1623 = dma.hbm_to_vmem [thread:$0]  (!%p2148_p11), %s2589_s1, 512, %s2141_s27, [#allocation6], %s2571_s13, %s2571_s13, %s2573_s14  }
  0x36   : > { %s1763_s12 = scalar_lea.hbm %s2558_s3, 256 }
  0x37   : > { %p1764_p1 = scmp.ne.s32.totalorder %s2558_s3, %s1763_s12  ;;  %p1770_p10 = scmp.lt.u32.totalorder %s1763_s12, %s2558_s3 }
  0x39   : > { %p1766_p2 = pnand %p1764_p1, %p2162_p13 }
  0x3b   : > { %p1767_p6 = pneg %p1766_p2 }
  0x3d   : > { %p1772_p3 = pnand %p1770_p10, %p1767_p6 }
  0x3f   : > { %1775 = shalt.err (!%p1772_p3)
}
  0x40   : > { %s1776_s27 = scalar_lea.vmem %s2152_s30, 256  ;;  %p1784_p12 = scmp.lt.s32.totalorder %s2152_s30, %s2152_s30 }
  0x41   : > { %p1777_p5 = scmp.ne.s32.totalorder %s2152_s30, %s1776_s27  ;;  %p1785_p0 = scmp.lt.s32.totalorder %s1776_s27, %s1776_s27 }
  0x43   : > { %p1779_p7 = pnand %p1777_p5, %p2162_p13  ;;  %p1786_p1 = por %p1785_p0, %p1784_p12 }
  0x45   : > { %p1780_p9 = pneg %p1779_p7 }
  0x47   : > { %p1787_p2 = pnand %p1786_p1, %p1780_p9 }
  0x49   : > { %1790 = shalt.err (!%p1787_p2)
}
  0x4a   : > { %s2577_s17 = smov 64   ;;  %s2022_s9 = smov 4  }
  0x4b   : > { %1629 = dma.hbm_to_vmem [thread:$0]  (!%p2148_p11), %s2558_s3, 256, %s2152_s30, [#allocation9], %s2577_s17, %s2577_s17, %s2022_s9  }
  0x4c   : > { %s2023_s15 = smov [#allocation7]   ;;  %s2024_s26 = smov [#allocation10]  }
  0x4d   : > { %s331_s16 = sshll.u32 %s2023_s15, 4  ;;  %s357_s29 = sshll.u32 %s2024_s26, 4  ;;  %s332_s16 = int_to_ptr.vmem [resolvable:$true] %s331_s16  ;;  %s2212_s29 = int_to_ptr.vmem [resolvable:$true] %s357_s29 }
  0x4e   : > { %s2591_s2 = sld [smem:[#allocation25_spill]] }
  0x54   : > { %s1791_s13 = scalar_lea.hbm %s2591_s2, 512 }
  0x55   : > { %p1792_p6 = scmp.ne.s32.totalorder %s2591_s2, %s1791_s13  ;;  %p1798_p5 = scmp.lt.u32.totalorder %s1791_s13, %s2591_s2 }
  0x57   : > { %p1794_p10 = pnand %p1792_p6, %p2162_p13 }
  0x59   : > { %p1795_p3 = pneg %p1794_p10 }
  0x5b   : > { %p1800_p7 = pnand %p1798_p5, %p1795_p3 }
  0x5d   : > { %1803 = shalt.err (!%p1800_p7)
}
  0x5e   : > { %s1804_s24 = scalar_lea.vmem %s332_s16, 512  ;;  %p1812_p1 = scmp.lt.s32.totalorder %s332_s16, %s332_s16 }
  0x5f   : > { %p1805_p9 = scmp.ne.s32.totalorder %s332_s16, %s1804_s24  ;;  %p1813_p2 = scmp.lt.s32.totalorder %s1804_s24, %s1804_s24 }
  0x61   : > { %p1807_p12 = pnand %p1805_p9, %p2162_p13  ;;  %p1814_p4 = por %p1813_p2, %p1812_p1 }
  0x63   : > { %p1808_p0 = pneg %p1807_p12 }
  0x65   : > { %p1815_p8 = pnand %p1814_p4, %p1808_p0 }
  0x67   : > { %1818 = shalt.err (!%p1815_p8)
}
  0x68   : > { %s2592_s1 = smov 8   ;;  %s2593_s14 = smov 128  }
  0x69   : > { %1626 = dma.hbm_to_vmem [thread:$0]  (!%p2148_p11), %s2591_s2, 512, %s332_s16, [#allocation6], %s2593_s14, %s2593_s14, %s2592_s1  }
  0x6a   : > { %s1819_s27 = scalar_lea.hbm %s2559_s4, 256 }
  0x6b   : > { %p1820_p6 = scmp.ne.s32.totalorder %s2559_s4, %s1819_s27  ;;  %p1826_p10 = scmp.lt.u32.totalorder %s1819_s27, %s2559_s4 }
  0x6d   : > { %p1822_p4 = pnand %p1820_p6, %p2162_p13 }
  0x6f   : > { %p1823_p8 = pneg %p1822_p4 }
  0x71   : > { %p1828_p3 = pnand %p1826_p10, %p1823_p8 }
  0x73   : > { %1831 = shalt.err (!%p1828_p3)
}
  0x74   : > { %s1832_s16 = scalar_lea.vmem %s2212_s29, 256  ;;  %p1840_p12 = scmp.lt.s32.totalorder %s2212_s29, %s2212_s29 }
  0x75   : > { %p1833_p5 = scmp.ne.s32.totalorder %s2212_s29, %s1832_s16  ;;  %p1841_p0 = scmp.lt.s32.totalorder %s1832_s16, %s1832_s16 }
  0x77   : > { %p1835_p7 = pnand %p1833_p5, %p2162_p13  ;;  %p1842_p1 = por %p1841_p0, %p1840_p12 }
  0x79   : > { %p1836_p9 = pneg %p1835_p7 }
  0x7b   : > { %p1843_p2 = pnand %p1842_p1, %p1836_p9 }
  0x7d   : > { %1846 = shalt.err (!%p1843_p2)
}
  0x7e   : > { %s2594_s17 = smov 64   ;;  %s2025_s26 = smov [#allocation11]  }
  0x7f   : > { %1632 = dma.hbm_to_vmem [thread:$0]  (!%p2148_p11), %s2559_s4, 256, %s2212_s29, [#allocation9], %s2594_s17, %s2594_s17, %s2022_s9  }
  0x80   : > { %s373_s12 = sshll.u32 %s2025_s26, 4  ;;  %s2262_s27 = sadd.s32 1, %s2015_s20   ;;  %s374_s12 = int_to_ptr.vmem [resolvable:$true] %s373_s12 }
  0x81   : > { %s1847_s24 = scalar_lea.hbm %s2561_s6, 256 }
  0x82   : > { %p1848_p6 = scmp.ne.s32.totalorder %s2561_s6, %s1847_s24  ;;  %p1854_p10 = scmp.lt.u32.totalorder %s1847_s24, %s2561_s6 }
  0x84   : > { %p1850_p4 = pnand %p1848_p6, %p2162_p13 }
  0x86   : > { %p1851_p8 = pneg %p1850_p4 }
  0x88   : > { %p1856_p3 = pnand %p1854_p10, %p1851_p8 }
  0x8a   : > { %1859 = shalt.err (!%p1856_p3)
}
  0x8b   : > { %s1860_s29 = scalar_lea.vmem %s374_s12, 256  ;;  %p1868_p12 = scmp.lt.s32.totalorder %s374_s12, %s374_s12 }
  0x8c   : > { %p1861_p5 = scmp.ne.s32.totalorder %s374_s12, %s1860_s29  ;;  %p1869_p0 = scmp.lt.s32.totalorder %s1860_s29, %s1860_s29 }
  0x8e   : > { %p1863_p7 = pnand %p1861_p5, %p2162_p13  ;;  %p1870_p1 = por %p1869_p0, %p1868_p12 }
  0x90   : > { %p1864_p9 = pneg %p1863_p7 }
  0x92   : > { %p1871_p2 = pnand %p1870_p1, %p1864_p9 }
  0x94   : > { %1874 = shalt.err (!%p1871_p2)
}
  0x95   : > { %1635 = dma.hbm_to_vmem [thread:$0]  (!%p2148_p11), %s2561_s6, 256, %s374_s12, [#allocation12], %s2594_s17, %s2594_s17, %s2022_s9  }
  0x96   : > { %s38_s22 = ssub.s32 %s2015_s20, %s2262_s27  ;;  %s41_s28 = sadd.s32 1, %s2011_s19 }
  0x97   : > { %p39_p13 = scmp.eq.s32.totalorder %s38_s22, 0  ;;  %p48_p6 = scmp.ne.s32.totalorder %s2011_s19, %s2007_s18 }
  0x98   : > { %p49_p4 = scmp.eq.s32.totalorder %s2015_s20, 0  ;;  %p1652_p8 = scmp.lt.s32.totalorder %s2015_s20, 2 }
  0x99   : > { %s2293_s10 = scalar_select %p39_p13, %s2011_s19, %s41_s28  }
  0x9a   : > { %p50_p10 = por %p49_p4, %p48_p6  ;;  %p2595_p3 = scmp.eq.s32.totalorder %s2118_s21, 1 }
  0x9b   : > { %s396_s24 = sand.u32 1, %s2011_s19   ;;  %s1443_s16 = sshll.u32 %s2015_s20, 7 }
  0x9c   : > { %p2297_p5 = por %p2595_p3, %p48_p6  ;;  %s1442_s15 = sshll.u32 %s396_s24, 4 }
  0x9d   : > { %s2306_s9 = scalar_lea.hbm %s2555_s0, %s1443_s16  ;;  %s400_s17 = scalar_lea.vmem [#allocation2], %s1442_s15 }
  0x9e   : > { %s406_s12 = sshll.u32 %s400_s17, 4  ;;  %p2308_p11 = pnand %p1652_p8, %p50_p10  ;;  %s2312_s12 = int_to_ptr.vmem [resolvable:$true] %s406_s12 }
  0x9f   : > { %s2314_s26 = scalar_lea.sflag [#allocation3], %s396_s24  ;;  %s1875_s22 = scalar_lea.hbm %s2306_s9, 256 }
  0xa0   : > { %p1876_p7 = scmp.ne.s32.totalorder %s2306_s9, %s1875_s22  ;;  %p1877_p9 = pneg %p2308_p11 }
  0xa1   : > { %s1880_s15 = scalar_lea.hbm %s2555_s0, 512  ;;  %p1881_p1 = scmp.lt.u32.totalorder %s2306_s9, %s2555_s0 }
  0xa2   : > { %p1878_p12 = pnand %p1877_p9, %p1876_p7  ;;  %p1882_p2 = scmp.lt.u32.totalorder %s1880_s15, %s1875_s22 }
  0xa3   : > { %p1884_p6 = scmp.lt.u32.totalorder %s1875_s22, %s2306_s9 }
  0xa4   : > { %p1879_p0 = pneg %p1878_p12  ;;  %p1883_p13 = por %p1882_p2, %p1881_p1 }
  0xa6   : > { %p1885_p4 = por %p1884_p6, %p1883_p13 }
  0xa8   : > { %p1886_p8 = pnand %p1885_p4, %p1879_p0 }
  0xaa   : > { %1889 = shalt.err (!%p1886_p8)
}
  0xab   : > { %s1890_s24 = scalar_lea.vmem %s2312_s12, 256  ;;  %s2026_s17 = smov [#allocation2]  }
  0xac   : > { %p1891_p10 = scmp.ne.s32.totalorder %s2312_s12, %s1890_s24  ;;  %s1895_s28 = sshll.u32 %s2026_s17, 4  ;;  %s1896_s28 = int_to_ptr.vmem [resolvable:$false] %s1895_s28 }
  0xad   : > { %s1897_s16 = scalar_lea.vmem %s1896_s28, 512  ;;  %p1898_p12 = scmp.lt.s32.totalorder %s2312_s12, %s1896_s28 }
  0xae   : > { %p1893_p3 = pnand %p1891_p10, %p1877_p9  ;;  %p1899_p1 = scmp.lt.s32.totalorder %s1897_s16, %s1890_s24 }
  0xb0   : > { %p1894_p7 = pneg %p1893_p3  ;;  %p1900_p2 = por %p1899_p1, %p1898_p12 }
  0xb2   : > { %p1901_p13 = pnand %p1900_p2, %p1894_p7 }
  0xb4   : > { %1904 = shalt.err (!%p1901_p13)
}
  0xb5   : > { %s2027_s22 = smov 256   ;;  %p2598_p9 = scmp.ne.s32.totalorder %s2587_s25, 0 }
  0xb6   : > { %1639 = dma.hbm_to_vmem [thread:$0]  (!%p2308_p11), %s2306_s9, 256, %s2312_s12, %s2314_s26, %s2027_s22, %s2593_s14, %s2592_s1  }
  0xb7   : > { %418 = sbr.rel (%p2598_p9) target bundleno = 1693 (0x69d), region = 60  ;;  %s2347_s15 = sand.u32 (!%p2598_p9), 1, %s2007_s18  }
  0xb8   : > { %s1445_s13 = sshll.u32 (!%p2598_p9), %s2347_s15, 4  ;;  %s421_s29 = scalar_lea.sflag (!%p2598_p9), [#allocation3], %s2347_s15 }
  0xb9   : > { %s424_s2 = scalar_lea.vmem (!%p2598_p9), [#allocation2], %s1445_s13  ;;  %p2599_p0 = scmp.ne.s32.totalorder (!%p2598_p9), %s2584_s23, 0 }
  0xbe   : > { %1978 = dma.done.wait (%p2599_p0), %s421_s29, 256  }
  0xbf   : > { %1980 = vsyncadd (%p2599_p0), %s421_s29, 4294967040  ;;  %p2600_p11 = scmp.eq.s32.totalorder %s2118_s21, 0 }
  0xc1   : > { %1982 = dma.done.wait (%p2600_p11), [#allocation6], 1024   ;;  %p2601_p6 = pmov %p2600_p11 }
  0xc3   : > { %1984 = vsyncadd (%p2601_p6), [#allocation6], 4294966272  ;;  %p2602_p4 = pmov %p2601_p6 }
  0xc5   : > { %1986 = dma.done.wait (%p2602_p4), [#allocation9], 512   ;;  %p2603_p8 = pmov %p2602_p4 }
  0xc6   : > { %p2604_p10 = pmov %p2602_p4 }
  0xc7   : > { %1988 = vsyncadd (%p2603_p8), [#allocation9], 4294966784 }
  0xc8   : > { %1990 = dma.done.wait (%p2604_p10), [#allocation12], 256   ;;  %p2605_p3 = pmov %p2602_p4 }
  0xc9   : > { %v2028_v0 = vmov 0.0   ;;  %vm2029_vm0 = vmmov 0   ;;  %v1713_v1 = vld [vmem:[#allocation10] sm:$0xff]   ;;  %v1714_v2 = vld [vmem:[#allocation10 + $0x8] sm:$0xff]   ;;  %v491_v3 = vld [vmem:[#allocation5] sm:$0xff]  ;;  %vm516_vm1 = vcmask 261120  }
  0xca   : > { %1992 = vsyncadd (%p2605_p3), [#allocation12], 4294967040  ;;  %1514 = vmatprep.subr.bf16.mxu0 %v2028_v0  ;;  %1518 = vmatprep.mubr.msk.bf16.mxu0 %vm2029_vm0, %v2028_v0  ;;  %v492_v4 = vld [vmem:[#allocation5 + $0x8] sm:$0xff]  ;;  %v493_v5 = vld [vmem:[#allocation5 + $0x10] sm:$0xff]  ;;  %vm711_vm2 = vcmask 130048   ;;  %s2030_s9 = smov 112  }
  0xcb   : > { %1522 = vmatprep.subr.bf16.mxu1 %v1713_v1  ;;  %v561_v6 = vpack.c.bf16 %v492_v4, %v491_v3  ;;  %v494_v7 = vld [vmem:[#allocation5 + $0x18] sm:$0xff]  ;;  %v1715_v8 = vld [vmem:[#allocation8] sm:$0xff]   ;;  %v1716_v9 = vld [vmem:[#allocation8 + $0x8] sm:$0xff]   ;;  %s1452_s12 = sshll.u32 %s2347_s15, 5  ;;  %s2031_s24 = smov 16  }
  0xcc   : > { %1523 = vmatpush3.bf16.msra.mxu1 %v1713_v1  ;;  %v2373_v10 = vld [vmem:[%s424_s2] sm:$0xff]  ;;  %v562_v11 = vpack.c.bf16 %v494_v7, %v493_v5  ;;  %1515 = vmatpush3.bf16.msra.mxu0 %v1715_v8  ;;  %v2375_v12 = vld [vmem:[%s424_s2 + $0x8] sm:$0xff]  ;;  %s2419_s26 = scalar_lea.vmem [#allocation14], %s1452_s12  ;;  %s1480_s16 = sshll.u32 %s2118_s21, 7 }
  0xcd   : > { %1524 = vmatprep.subr.bf16.mxu1 %v1714_v2  ;;  %1526 = vmatprep.mubr.msk.bf16.mxu1 %vm516_vm1, %v561_v6  ;;  %v1717_v13 = vld [vmem:[%s2560_s5] sm:$0xff]   ;;  %v499_v14 = vpack.c.bf16 %v2375_v12, %v2373_v10  ;;  %v1718_v15 = vld [vmem:[%s2560_s5 + $0x8] sm:$0xff]   ;;  %v497_v19 = vld [vmem:[#allocation7 + $0x10] sm:$0xff]  ;;  %s2459_s2 = scalar_lea.hbm %s2566_s11, %s1480_s16  ;;  %s1281_s23 = sshll.u32 %s2419_s26, 4  ;;  %s2462_s23 = int_to_ptr.vmem [resolvable:$true] %s1281_s23 }
  0xce   : > { %1516 = vmatprep.subr.bf16.mxu0 %v2028_v0  ;;  %v495_v16 = vld [vmem:[#allocation7] sm:$0xff]  ;;  %v496_v17 = vld [vmem:[#allocation7 + $0x8] sm:$0xff]  ;;  %v498_v20 = vld [vmem:[#allocation7 + $0x18] sm:$0xff]  ;;  %s1254_s25 = scalar_lea.sflag [#allocation15], %s2347_s15  ;;  %s1905_s1 = scalar_lea.vmem %s2462_s23, 512 }
  0xcf   : > { %v634_v18 = vpack.c.bf16 %v496_v17, %v495_v16  ;;  %v635_v21 = vpack.c.bf16 %v498_v20, %v497_v19  ;;  %p1906_p7 = scmp.ne.s32.totalorder %s2462_s23, %s1905_s1  ;;  %s2032_s14 = smov [#allocation14]  }
  0xd0   : > { %1525 = vmatpush3.bf16.msra.mxu1 %v1714_v2  ;;  %1517 = vmatpush3.bf16.msra.mxu0 %v1716_v9 }
  0xd1   : > { %1538 = vmatprep.subr.bf16.mxu1 %v2028_v0  ;;  %1530 = vmatprep.subr.bf16.mxu0 %v1717_v13  ;;  %p1907_p12 = pnand %p1906_p7, %p2297_p5 }
  0xd3   : > { %1527 = vmatmul.mubr.msk.bf16.vlgmr.msra.gmra.mrb[0].mxu1 %vm516_vm1, %v562_v11  ;;  %1519 = vmatmul.mubr.msk.bf16.vlgmr.msra.gmra.mrb[0].mxu0 %vm516_vm1, %v499_v14  ;;  %p1908_p1 = pneg %p1907_p12 }
  0xd4   : > { %1540 = vmatprep.mubr.msk.bf16.mxu1 %vm2029_vm0, %v2028_v0  ;;  %1531 = vmatpush3.bf16.msra.mxu0 %v1717_v13 }
  0xd5   : > { %1532 = vmatprep.subr.bf16.mxu0 %v1718_v15  ;;  %1534 = vmatprep.mubr.msk.bf16.mxu0 %vm516_vm1, %v634_v18 }
  0xd8   : > { %1533 = vmatpush3.bf16.msra.mxu0 %v1718_v15 }
  0xd9   : > { %1544 = vmatprep.subr.bf16.mxu0 %v2028_v0 }
  0xdb   : > { %1535 = vmatmul.mubr.msk.bf16.vlgmr.msra.gmra.mrb[4].mxu0 %vm516_vm1, %v635_v21 }
  0xdc   : > { %1546 = vmatprep.mubr.msk.bf16.mxu0 %vm2029_vm0, %v2028_v0 }
 0x1a6   : > { %v1528_v22 = vpop.f32.mrb[0].mxu1  ;;  %v554_v27 = vpop.f32.mrb[0].mxu0 }
 0x1a7   : > { %v619_v23 = vpop.f32.mrb[1].mxu1  ;;  %v707_v29 = vpack.c.bf16 %v554_v27, %v554_v27  ;;  %v1520_v30 = vpop.f32.mrb[1].mxu0 }
 0x1a8   : > { %v1529_v24 = vpop.f32.mrb[2].mxu1  ;;  %v557_v32 = vpop.f32.mrb[2].mxu0 }
 0x1a9   : > { %v710_v25 = vpack.c.bf16 %v1529_v24, %v1528_v22  ;;  %v622_v26 = vpop.f32.mrb[3].mxu1  ;;  %v1521_v34 = vpop.f32.mrb[3].mxu0  ;;  %v708_v35 = vpack.c.bf16 %v557_v32, %v557_v32  ;;  %805 = vrot.lane.b32.xlu1 %v707_v29, %s2030_s9  ;;  %v1719_v32 = vld [vmem:[#allocation11] sm:$0xff]  }
 0x1aa   : > { %v709_v28 = vpack.c.bf16 %v622_v26, %v619_v23 }
 0x1ab   : > { %v762_v31 = vsel %vm711_vm2, %v710_v25, 0 }
 0x1ac   : > { %v716_v33 = vsel %vm711_vm2, %v709_v28, 0  ;;  %808 = vrot.lane.b32.xlu0 %v709_v28, %s2030_s9  ;;  %1545 = vmatpush3.bf16.xpose.msra.mxu0 %v762_v31 }
 0x1ad   : > { %1539 = vmatpush3.bf16.xpose.msra.mxu1 %v716_v33  ;;  %1556 = vmatprep.subr.bf16.mxu0 %v2028_v0 }
 0x1ae   : > { %1550 = vmatprep.subr.bf16.mxu1 %v2028_v0  ;;  %857 = vrot.lane.b32.xlu1 %v708_v35, %s2030_s9  ;;  %v1536_v36 = vpop.f32.mrb[4].mxu0 }
 0x1af   : > { %v692_v37 = vpop.f32.mrb[5].mxu0 }
 0x1b0   : > { %860 = vrot.lane.b32.xlu0 %v710_v25, %s2030_s9  ;;  %v1537_v38 = vpop.f32.mrb[6].mxu0 }
 0x1b1   : > { %v938_v39 = vpack.c.bf16 %v1537_v38, %v1536_v36  ;;  %v695_v40 = vpop.f32.mrb[7].mxu0 }
 0x1b2   : > { %v937_v41 = vpack.c.bf16 %v695_v40, %v692_v37 }
 0x1b3   : > { %1547 = vmatmul.mubr.msk.bf16.vlgmr.msra.gmra.mrb[8].mxu0 %vm711_vm2, %v708_v35  ;;  %1075 = vrot.lane.b32.xlu1 %v938_v39, %s2030_s9  ;;  %v1720_v35 = vld [vmem:[#allocation11 + $0x8] sm:$0xff]  }
 0x1b4   : > { %1541 = vmatmul.mubr.msk.bf16.vlgmr.msra.gmra.mrb[4].mxu1 %vm711_vm2, %v707_v29  ;;  %1558 = vmatprep.mubr.msk.bf16.mxu0 %vm2029_vm0, %v2028_v0 }
 0x1b5   : > { %1552 = vmatprep.mubr.msk.bf16.mxu1 %vm2029_vm0, %v2028_v0  ;;  %1028 = vrot.lane.b32.xlu0 %v937_v41, %s2030_s9  ;;  %s1909_s9 = sshll.u32 %s2032_s14, 4  ;;  %s1910_s9 = int_to_ptr.vmem [resolvable:$false] %s1909_s9 }
 0x1b6   : > { %s1911_s12 = scalar_lea.vmem %s1910_s9, 1024  ;;  %p1912_p2 = scmp.lt.s32.totalorder %s2462_s23, %s1910_s9 }
 0x1b7   : > { %p1913_p13 = scmp.lt.s32.totalorder %s1911_s12, %s1905_s1 }
 0x1b9   : > { %p1914_p9 = por %p1913_p13, %p1912_p2 }
 0x1bb   : > { %p1915_p0 = pnand %p1914_p9, %p1908_p1 }
 0x21b   : > { %v806_v46 = vpop.permute.xlu1 %805 }
 0x21e   : > { %v809_v42 = vpop.permute.xlu0 %808 }
 0x21f   : > { %v814_v43 = vsel %vm711_vm2, %v809_v42, 0 }
 0x220   : > { %1551 = vmatpush3.bf16.xpose.msra.mxu1 %v814_v43  ;;  %v858_v47 = vpop.permute.xlu1 %857 }
 0x221   : > { %1562 = vmatprep.subr.bf16.mxu1 %v2028_v0 }
 0x222   : > { %v861_v44 = vpop.permute.xlu0 %860 }
 0x223   : > { %v866_v45 = vsel %vm711_vm2, %v861_v44, 0 }
 0x224   : > { %1557 = vmatpush3.bf16.xpose.msra.mxu0 %v866_v45 }
 0x225   : > { %1568 = vmatprep.subr.bf16.mxu0 %v2028_v0  ;;  %v1076_v26 = vpop.permute.xlu1 %1075 }
 0x227   : > { %1553 = vmatmul.mubr.msk.bf16.vlgmr.msra.gmra.mrb[8].mxu1 %vm711_vm2, %v806_v46  ;;  %v1029_v27 = vpop.permute.xlu0 %1028 }
 0x228   : > { %1563 = vmatpush3.bf16.msra.mxu1 %v937_v41  ;;  %1564 = vmatprep.mubr.msk.bf16.mxu1 %vm2029_vm0, %v2028_v0 }
 0x229   : > { %1574 = vmatprep.subr.bf16.mxu1 %v2028_v0 }
 0x22b   : > { %1559 = vmatmul.mubr.msk.bf16.vlgmr.msra.gmra.mrb[12].mxu0 %vm711_vm2, %v858_v47 }
 0x22c   : > { %1569 = vmatpush3.bf16.msra.mxu0 %v938_v39  ;;  %1570 = vmatprep.mubr.msk.bf16.mxu0 %vm2029_vm0, %v2028_v0 }
 0x22d   : > { %1580 = vmatprep.subr.bf16.mxu0 %v2028_v0 }
 0x286   : > { %v798_v48 = vpop.f32.mrb[8].mxu0 }
 0x287   : > { %v752_v49 = vpop.f32.mrb[4].mxu1  ;;  %v1548_v50 = vpop.f32.mrb[9].mxu0 }
 0x288   : > { %v908_v51 = vmax.f32 %v752_v49, %v798_v48  ;;  %v1542_v52 = vpop.f32.mrb[5].mxu1  ;;  %v801_v53 = vpop.f32.mrb[10].mxu0 }
 0x289   : > { %v755_v54 = vpop.f32.mrb[6].mxu1  ;;  %v1549_v55 = vpop.f32.mrb[11].mxu0 }
 0x28a   : > { %v1543_v56 = vpop.f32.mrb[7].mxu1 }
 0x28b   : > { %v1472_v56 = vld [vmem:[%s2562_s7] ss:$0 sm:$0xff] }
 0x2fa   : > { %v850_v57 = vpop.f32.mrb[8].mxu1 }
 0x2fb   : > { %v909_v58 = vmax.f32 %v908_v51, %v850_v57  ;;  %v1554_v59 = vpop.f32.mrb[9].mxu1 }
 0x2fc   : > { %v853_v60 = vpop.f32.mrb[10].mxu1 }
 0x2fd   : > { %v1555_v61 = vpop.f32.mrb[11].mxu1 }
 0x2fe   : > { %v902_v62 = vpop.f32.mrb[12].mxu0 }
 0x2ff   : > { %v910_v63 = vmax.f32 %v909_v58, %v902_v62  ;;  %v1560_v1 = vpop.f32.mrb[13].mxu0 }
 0x300   : > { %v905_v2 = vpop.f32.mrb[14].mxu0 }
 0x301   : > { %v911_v3 = vsub.f32 %v752_v49, %v910_v63  ;;  %v912_v4 = vsub.f32 %v798_v48, %v910_v63  ;;  %v913_v5 = vsub.f32 %v850_v57, %v910_v63  ;;  %v914_v6 = vsub.f32 %v902_v62, %v910_v63  ;;  %v1561_v7 = vpop.f32.mrb[15].mxu0 }
 0x303   : > { %v915_v8 = vmul.f32 1.442695, %v911_v3  ;;  %v917_v9 = vmul.f32 1.442695, %v912_v4  ;;  %v919_v11 = vmul.f32 1.442695, %v913_v5 }
 0x304   : > { %v921_v13 = vmul.f32 1.442695, %v914_v6 }
 0x305   : > { %1721 = vpow2.f32 %v915_v8 }
 0x306   : > { %1723 = vpow2.f32 %v917_v9 }
 0x307   : > { %1725 = vpow2.f32 %v919_v11 }
 0x308   : > { %1727 = vpow2.f32 %v921_v13 }
 0x30f   : > { %v1722_v14 = vpop.eup %1721 }
 0x310   : > { %v1724_v15 = vpop.eup %1723 }
 0x311   : > { %v923_v16 = vadd.f32 %v1724_v15, %v1722_v14  ;;  %v1726_v17 = vpop.eup %1725 }
 0x312   : > { %v1728_v19 = vpop.eup %1727 }
 0x313   : > { %v924_v18 = vadd.f32 %v1726_v17, %v923_v16 }
 0x315   : > { %v925_v20 = vadd.f32 %v1728_v19, %v924_v18 }
 0x317   : > { %1729 = vrcp.f32 %v925_v20 }
 0x321   : > { %v1730_v21 = vpop.eup %1729 }
 0x322   : > { %v930_v22 = vmul.f32 %v1730_v21, %v1728_v19  ;;  %v927_v23 = vmul.f32 %v1730_v21, %v1722_v14  ;;  %v928_v24 = vmul.f32 %v1730_v21, %v1724_v15  ;;  %v929_v25 = vmul.f32 %v1730_v21, %v1726_v17 }
 0x324   : > { %934 = vst.msk [vmem:[%s2419_s26 + $0x18] sm:$0xff] %vm711_vm2, %v930_v22  ;;  %931 = vst.msk [vmem:[%s2419_s26] sm:$0xff] %vm711_vm2, %v927_v23  ;;  %v935_v28 = vpack.c.bf16 %v927_v23, %v927_v23  ;;  %v936_v29 = vpack.c.bf16 %v928_v24, %v928_v24  ;;  %v1025_v30 = vpack.c.bf16 %v929_v25, %v929_v25 }
 0x325   : > { %932 = vst.msk [vmem:[%s2419_s26 + $0x8] sm:$0xff] %vm711_vm2, %v928_v24  ;;  %933 = vst.msk [vmem:[%s2419_s26 + $0x10] sm:$0xff] %vm711_vm2, %v929_v25  ;;  %v1026_v31 = vpack.c.bf16 %v930_v22, %v930_v22 }
 0x326   : > { %1565 = vmatmul.mubr.msk.bf16.vlgmr.msra.gmra.mrb[12].mxu1 %vm711_vm2, %v935_v28  ;;  %1571 = vmatmul.mubr.msk.bf16.vlgmr.msra.gmra.mrb[16].mxu0 %vm711_vm2, %v936_v29 }
 0x327   : > { %1575 = vmatpush3.bf16.msra.mxu1 %v1029_v27  ;;  %1581 = vmatpush3.bf16.msra.mxu0 %v1076_v26 }
 0x328   : > { %1576 = vmatprep.mubr.msk.bf16.mxu1 %vm2029_vm0, %v2028_v0  ;;  %1582 = vmatprep.mubr.msk.bf16.mxu0 %vm2029_vm0, %v2028_v0 }
 0x329   : > { %1586 = vmatprep.subr.bf16.mxu1 %v2028_v0 }
 0x32e   : > { %1577 = vmatmul.mubr.msk.bf16.vlgmr.msra.gmra.mrb[16].mxu1 %vm711_vm2, %v1025_v30  ;;  %1583 = vmatmul.mubr.msk.bf16.vlgmr.msra.gmra.mrb[20].mxu0 %vm711_vm2, %v1026_v31 }
 0x32f   : > { %1590 = vmatprep.mubr.msk.bf16.mxu1 %vm2029_vm0, %v2028_v0  ;;  %1587 = vmatpush3.bf16.msra.mxu1 %v1719_v32 }
 0x330   : > { %1588 = vmatprep.subr.bf16.mxu1 %v2028_v0 }
 0x333   : > { %1589 = vmatpush3.bf16.msra.mxu1 %v1720_v35 }
 0x3f9   : > { %v976_v33 = vpop.f32.mrb[12].mxu1  ;;  %v1019_v34 = vpop.f32.mrb[16].mxu0 }
 0x3fa   : > { %v1566_v36 = vpop.f32.mrb[13].mxu1  ;;  %v1572_v37 = vpop.f32.mrb[17].mxu0 }
 0x3fb   : > { %v979_v38 = vpop.f32.mrb[14].mxu1  ;;  %v1022_v39 = vpop.f32.mrb[18].mxu0 }
 0x3fc   : > { %v1567_v40 = vpop.f32.mrb[15].mxu1  ;;  %v1573_v41 = vpop.f32.mrb[19].mxu0 }
 0x401   : > { %v1068_v42 = vpop.f32.mrb[16].mxu1  ;;  %v1115_v43 = vpop.f32.mrb[20].mxu0 }
 0x402   : > { %v1708_v44 = vpack.i.bf16 %v1115_v43, %v1068_v42  ;;  %v1578_v45 = vpop.f32.mrb[17].mxu1  ;;  %v1584_v46 = vpop.f32.mrb[21].mxu0 }
 0x403   : > { %v1071_v47 = vpop.f32.mrb[18].mxu1  ;;  %v1118_v48 = vpop.f32.mrb[22].mxu0 }
 0x404   : > { %v1579_v49 = vpop.f32.mrb[19].mxu1  ;;  %1709 = vrot.lane.b32.xlu0 %v1708_v44, %s2031_s24  ;;  %v1585_v0 = vpop.f32.mrb[23].mxu0 }
 0x476   : > { %v1710_v50 = vpop.permute.xlu0 %1709 }
 0x477   : > { %v1712_v51 = vunpack.i.h.bf16 %v1710_v50  ;;  %v1711_v52 = vunpack.i.l.bf16 %v1710_v50 }
 0x479   : > { %v1130_v53 = vsel %vm711_vm2, %v1019_v34, %v1712_v51  ;;  %v1129_v54 = vsel %vm711_vm2, %v976_v33, %v1711_v52 }
 0x47a   : > { %v1131_v55 = vpack.c.bf16 %v1130_v53, %v1129_v54 }
 0x47c   : > { %1591 = vmatmul.mubr.msk.bf16.vlgmr.msra.gmra.mrb[20].mxu1 %vm516_vm1, %v1131_v55 }
 0x54f   : > { %v1192_v57 = vpop.f32.mrb[20].mxu1 }
 0x550   : > { %v1193_v58 = vadd.f32 %v1472_v56, %v1192_v57  ;;  %v1592_v59 = vpop.f32.mrb[21].mxu1 }
 0x551   : > { %v1195_v60 = vpop.f32.mrb[22].mxu1 }
 0x552   : > { %v1196_v61 = vadd.f32 %v1472_v56, %v1195_v60  ;;  %v1593_v62 = vpop.f32.mrb[23].mxu1  ;;  %v1199_v63 = vadd.f32 %v1193_v58, %v2373_v10 }
 0x554   : > { %v1201_v1 = vsel %vm516_vm1, %v1199_v63, 0.0  ;;  %v1200_v2 = vadd.f32 %v1196_v61, %v2375_v12 }
 0x555   : > { %1202 = vadd.xlane.f32.xlu1 %v1201_v1 }
 0x556   : > { %v1204_v3 = vsel %vm516_vm1, %v1200_v2, 0.0 }
 0x557   : > { %1205 = vadd.xlane.f32.xlu0 %v1204_v3 }
 0x5e2   : > { %v1203_v4 = vpop.xlane.xlu1 %1202 }
 0x5e3   : > { %v1208_v5 = vmul.f32 0.03125, %v1203_v4 }
 0x5e4   : > { %v1206_v6 = vpop.xlane.xlu0 %1205 }
 0x5e5   : > { %v1210_v7 = vsub.f32 %v1199_v63, %v1208_v5  ;;  %v1209_v8 = vmul.f32 0.03125, %v1206_v6 }
 0x5e7   : > { %v1211_v9 = vsub.f32 %v1200_v2, %v1209_v8  ;;  %v1212_v10 = vmul.f32 %v1210_v7, %v1210_v7 }
 0x5e9   : > { %v1214_v11 = vsel %vm516_vm1, %v1212_v10, 0.0  ;;  %v1213_v13 = vmul.f32 %v1211_v9, %v1211_v9 }
 0x5ea   : > { %1215 = vadd.xlane.f32.xlu0 %v1214_v11 }
 0x5eb   : > { %v1217_v12 = vsel %vm516_vm1, %v1213_v13, 0.0 }
 0x5ec   : > { %1218 = vadd.xlane.f32.xlu1 %v1217_v12 }
 0x5ed   : > { %1918 = shalt.err (!%p1915_p0)
}
 0x5ee   : > { %s1919_s26 = scalar_lea.hbm %s2459_s2, 512  ;;  %s1923_s28 = scalar_lea.hbm %s2566_s11, 1024 }
 0x5ef   : > { %p1920_p11 = scmp.ne.s32.totalorder %s2459_s2, %s1919_s26  ;;  %p1924_p8 = scmp.lt.u32.totalorder %s2459_s2, %s2566_s11 }
 0x5f0   : > { %p1925_p10 = scmp.lt.u32.totalorder %s1923_s28, %s1919_s26  ;;  %p1927_p7 = scmp.lt.u32.totalorder %s1919_s26, %s2459_s2 }
 0x5f1   : > { %p1921_p6 = pnand %p1920_p11, %p2297_p5 }
 0x5f2   : > { %p1926_p3 = por %p1925_p10, %p1924_p8 }
 0x5f3   : > { %p1922_p4 = pneg %p1921_p6 }
 0x5f4   : > { %p1928_p12 = por %p1927_p7, %p1926_p3 }
 0x5f6   : > { %p1929_p1 = pnand %p1928_p12, %p1922_p4 }
 0x5f8   : > { %1932 = shalt.err (!%p1929_p1)
}
 0x5f9   : > { %s2033_s1 = smov 128   ;;  %s2034_s14 = smov 256   ;;  %v1476_v21 = vld [vmem:[%s2563_s8] ss:$0 sm:$0xff] }
 0x5fa   : > { %s2035_s9 = smov 8   ;;  %s2607_s29 = sld [smem:[#allocation27_spill]] }
 0x5fb   : > { %1617 = dma.vmem_to_hbm [thread:$0]  (%p2297_p5), %s2462_s23, 512, %s2459_s2, %s1254_s25, %s2033_s1, %s2034_s14, %s2035_s9  }
 0x5fc   : > { %s2606_s23 = sld [smem:[#allocation26_spill]]  ;;  %s480_s25 = scalar_lea.vmem [#allocation13], %s1445_s13 }
 0x5fd   : > { %s1266_s17 = sshll.u32 %s480_s25, 4  ;;  %s1249_s13 = scalar_lea.sflag [#allocation4], %s2347_s15  ;;  %s2507_s17 = int_to_ptr.vmem [resolvable:$true] %s1266_s17 }
 0x5fe   : > { %s1933_s26 = scalar_lea.vmem %s2507_s17, 256  ;;  %s2036_s24 = smov [#allocation13]  }
 0x5ff   : > { %p1934_p2 = scmp.ne.s32.totalorder %s2507_s17, %s1933_s26  ;;  %s1937_s21 = sshll.u32 %s2036_s24, 4  ;;  %s1938_s21 = int_to_ptr.vmem [resolvable:$false] %s1937_s21 }
 0x600   : > { %s2505_s12 = scalar_lea.hbm %s2607_s29, %s1480_s16  ;;  %s1939_s2 = scalar_lea.vmem %s1938_s21, 512 }
 0x601   : > { %p1935_p13 = pnand %p1934_p2, %p2297_p5  ;;  %p1940_p0 = scmp.lt.s32.totalorder %s2507_s17, %s1938_s21 }
 0x602   : > { %v1477_v24 = vld [vmem:[%s2606_s23] ss:$0 sm:$0xff]  ;;  %p1941_p11 = scmp.lt.s32.totalorder %s1939_s2, %s1933_s26 }
 0x603   : > { %p1936_p9 = pneg %p1935_p13 }
 0x604   : > { %p1942_p6 = por %p1941_p11, %p1940_p0 }
 0x606   : > { %p1943_p4 = pnand %p1942_p6, %p1936_p9 }
 0x677   : > { %v1216_v14 = vpop.xlane.xlu0 %1215 }
 0x678   : > { %v1220_v15 = vmul.f32 0.03125, %v1216_v14 }
 0x679   : > { %v1219_v16 = vpop.xlane.xlu1 %1218 }
 0x67a   : > { %v1222_v17 = vadd.f32 1e-05, %v1220_v15  ;;  %v1221_v18 = vmul.f32 0.03125, %v1219_v16 }
 0x67c   : > { %1731 = vrsqrt.f32 %v1222_v17  ;;  %v1223_v19 = vadd.f32 1e-05, %v1221_v18 }
 0x67e   : > { %1733 = vrsqrt.f32 %v1223_v19 }
 0x686   : > { %v1732_v20 = vpop.eup %1731 }
 0x687   : > { %v1226_v22 = vmul.f32 %v1732_v20, %v1210_v7 }
 0x688   : > { %v1734_v23 = vpop.eup %1733 }
 0x689   : > { %v1235_v25 = vmul.f32 %v1476_v21, %v1226_v22  ;;  %v1227_v26 = vmul.f32 %v1734_v23, %v1211_v9 }
 0x68b   : > { %v1244_v27 = vadd.f32 %v1477_v24, %v1235_v25  ;;  %v1236_v28 = vmul.f32 %v1476_v21, %v1227_v26 }
 0x68d   : > { %v1245_v29 = vadd.f32 %v1477_v24, %v1236_v28  ;;  %1246 = vst.msk [vmem:[%s480_s25] sm:$0xff] %vm516_vm1, %v1244_v27 }
 0x68f   : > { %1247 = vst.msk [vmem:[%s480_s25 + $0x8] sm:$0xff] %vm516_vm1, %v1245_v29 }
 0x690   : > { %1946 = shalt.err (!%p1943_p4)
}
 0x691   : > { %s1947_s16 = scalar_lea.hbm %s2505_s12, 256  ;;  %s1951_s28 = scalar_lea.hbm %s2607_s29, 512 }
 0x692   : > { %p1948_p8 = scmp.ne.s32.totalorder %s2505_s12, %s1947_s16  ;;  %p1952_p7 = scmp.lt.u32.totalorder %s2505_s12, %s2607_s29 }
 0x693   : > { %p1953_p12 = scmp.lt.u32.totalorder %s1951_s28, %s1947_s16  ;;  %p1955_p2 = scmp.lt.u32.totalorder %s1947_s16, %s2505_s12 }
 0x694   : > { %p1949_p10 = pnand %p1948_p8, %p2297_p5 }
 0x695   : > { %p1954_p1 = por %p1953_p12, %p1952_p7 }
 0x696   : > { %p1950_p3 = pneg %p1949_p10 }
 0x697   : > { %p1956_p13 = por %p1955_p2, %p1954_p1 }
 0x699   : > { %p1957_p9 = pnand %p1956_p13, %p1950_p3 }
 0x69b   : > { %1960 = shalt.err (!%p1957_p9)
}
 0x69c   : > { %1616 = dma.vmem_to_hbm [thread:$0]  (%p2297_p5), %s2507_s17, 256, %s2505_s12, %s1249_s13, %s2033_s1, %s2034_s14, %s2035_s9  }
 0x69d PF: > { %s2608_s26 = sld [smem:[#allocation22_spill]]  ;;  %s2609_s21 = sld [smem:[#allocation23_spill]] }
 0x69e   : > { %p2611_p11 = scmp.ge.s32.totalorder %s2015_s20, 2 }
 0x6a3   : > { %s1296_s2 = sand.u32 1, %s2608_s26   ;;  %p2610_p0 = scmp.ne.s32.totalorder %s2609_s21, 0 }
 0x6a4   : > { %s1297_s16 = scalar_lea.sflag [#allocation4], %s1296_s2 }
 0x6a5   : > { %p1641_p6 = pnand %p2611_p11, %p2610_p0 }
 0x6a7   : > { %1994 = dma.done.wait (!%p1641_p6), %s1297_s16, 256  }
 0x6a8   : > { %1996 = vsyncadd (!%p1641_p6), %s1297_s16, 4294967040  ;;  %s1306_s30 = scalar_lea.sflag [#allocation15], %s1296_s2 }
 0x6a9   : > { %1998 = dma.done.wait (!%p1641_p6), %s1306_s30, 512  }
 0x6aa   : > { %2000 = vsyncadd (!%p1641_p6), %s1306_s30, 4294966784  ;;  %p31_p5 = scmp.ge.s32.totalorder %s2262_s27, 4   ;;  %s2612_s17 = smov %s2007_s18 }
 0x6ab   : > { %s2613_s18 = smov %s2011_s19  ;;  %s2614_s19 = smov %s2293_s10 }
 0x6ac   : > { %s2615_s20 = smov %s2262_s27  ;;  %33 = sbr.rel (!%p31_p5) target bundleno = 15 (0xf), region = 142 }
 0x6b3   :  { %1311 = vsyncpa [#allocation3], 1 }
 0x6b4   :  { %1313 = vsyncpa [#allocation3 + $0x1], 1 }
 0x6b5   :  { %1314 = vsyncpa [#allocation6], 1 }
 0x6b6   :  { %1315 = vsyncpa [#allocation9], 1 }
 0x6b7   :  { %1316 = vsyncpa [#allocation12], 1 }
 0x6b8   :  { %1317 = vsyncpa [#allocation4], 1 }
 0x6b9   :  { %1319 = vsyncpa [#allocation4 + $0x1], 1 }
 0x6ba   :  { %1320 = vsyncpa [#allocation15], 1 }
 0x6bb   :  { %1322 = vsyncpa [#allocation15 + $0x1], 1 }

</bundles_post_ra>
